<compile_context>
chip_gen: v7x
topology: tpu7x:2x2x1
jax: 0.10.0
libtpu: 0.0.40
codegen_flags: <defaults>
</compile_context>

<pallas_src>
import jax
import jax.numpy as jnp
from jax.experimental import pallas as pl
from jax.experimental.pallas import tpu as pltpu

EPS = 1e-5  # nn.InstanceNorm1d default eps


def _add_instancenorm_kernel(x1_ref, x2_ref, w_ref, b_ref, o_ref):
    # x1/x2/o blocks: (1, N, TE) ; w/b blocks: (1, TE)
    x = x1_ref[...].astype(jnp.float32) + x2_ref[...].astype(jnp.float32)
    inv_n = jnp.float32(1.0 / x.shape[1])

    # InstanceNorm1d: biased moments over the sequence axis N (two-pass for
    # numerical robustness; sums instead of means to avoid per-element divides).
    mean = jnp.sum(x, axis=1, keepdims=True) * inv_n                 # (1,1,TE)
    centered = x - mean
    var = jnp.sum(centered * centered, axis=1, keepdims=True) * inv_n
    inv_std = jax.lax.rsqrt(var + EPS)                               # EUP

    # Fuse the affine scale into inv_std: a single N*TE multiply-add sweep.
    scale = inv_std * w_ref[...].astype(jnp.float32)[:, None, :]     # (1,1,TE)
    shift = b_ref[...].astype(jnp.float32)[:, None, :]               # (1,1,TE)
    o_ref[...] = (centered * scale + shift).astype(o_ref.dtype)


def _pick_e_tile(n, e, itemsize, vmem_budget_bytes=12 * 1024 * 1024):
    """Largest TE that is a multiple of 128, divides E, and keeps the per-tile
    working set (double-buffered 2 inputs + 1 output + f32 temporaries) under
    a budget safe for v5e (16 MiB scoped), v6e (32 MiB) and v7x (32/64 MiB)."""
    if e % 128 != 0:
        # Lane-sparse / odd E: fall back to a full-E block (block dim == array dim).
        return e
    best = 128
    te = 128
    while te <= e:
        if e % te == 0:
            tile_bytes = 6 * n * te * itemsize + 2 * n * te * 4
            if tile_bytes <= vmem_budget_bytes:
                best = te
            else:
                break
        te += 128
    return best


def add_and_instance_norm(input1, input2, weight, bias):
    """input1, input2: (B, N, E); weight, bias: (E,). Returns (B, N, E)."""
    B, N, E = input1.shape
    itemsize = jnp.dtype(input1.dtype).itemsize
    TE = _pick_e_tile(N, E, itemsize)
    grid = (B, E // TE)

    w2d = weight.reshape(1, E)
    b2d = bias.reshape(1, E)

    cost = pl.CostEstimate(
        flops=8 * B * N * E,
        transcendentals=B * E,
        bytes_accessed=3 * B * N * E * itemsize
        + 2 * E * jnp.dtype(weight.dtype).itemsize,
    )

    return pl.pallas_call(
        _add_instancenorm_kernel,
        out_shape=jax.ShapeDtypeStruct((B, N, E), input1.dtype),
        grid_spec=pltpu.PrefetchScalarGridSpec(
            num_scalar_prefetch=0,
            grid=grid,
            in_specs=[
                pl.BlockSpec((1, N, TE), lambda b, e: (b, 0, e)),
                pl.BlockSpec((1, N, TE), lambda b, e: (b, 0, e)),
                pl.BlockSpec((1, TE), lambda b, e: (0, e)),
                pl.BlockSpec((1, TE), lambda b, e: (0, e)),
            ],
            out_specs=pl.BlockSpec((1, N, TE), lambda b, e: (b, 0, e)),
        ),
        compiler_params=pltpu.CompilerParams(
            dimension_semantics=("parallel", "parallel"),
        ),
        cost_estimate=cost,
    )(input1, input2, w2d, b2d)


def reference(input1, input2, weight, bias):
    x = (input1 + input2).astype(jnp.float32)
    mean = jnp.mean(x, axis=1, keepdims=True)
    var = jnp.mean((x - mean) ** 2, axis=1, keepdims=True)
    y = (x - mean) / jnp.sqrt(var + EPS)
    return y * weight[None, None, :] + bias[None, None, :]


if __name__ == "__main__":
    # (batch, problem_size, embedding_dim) — embedding_dim = 128 as in the
    # ATSP model (lane-dense), problem_size kept small for the smoke test.
    B, N, E = 2, 8, 128
    key = jax.random.PRNGKey(0)
    k1, k2, k3, k4 = jax.random.split(key, 4)

    input1 = jax.random.normal(k1, (B, N, E), dtype=jnp.float32)
    input2 = jax.random.normal(k2, (B, N, E), dtype=jnp.float32)

    # PyTorch default affine init is ones/zeros; use nontrivial deterministic
    # values so the affine path is actually exercised.
    weight = 1.0 + 0.1 * jax.random.normal(k3, (E,), dtype=jnp.float32)
    bias = 0.1 * jax.random.normal(k4, (E,), dtype=jnp.float32)

    out = add_and_instance_norm(input1, input2, weight, bias)
    out = jax.block_until_ready(out)

    ref = reference(input1, input2, weight, bias)
    assert out.shape == (B, N, E)
    assert jnp.allclose(out, ref, atol=1e-5, rtol=1e-5), "mismatch vs reference"

    print("KERNEL_OK")
</pallas_src>

<mosaic_0001>
module attributes {stable_mosaic.version = 11 : i64} {
  func.func @_add_instancenorm_kernel(%arg0: i32, %arg1: i32, %arg2: memref<1x8x128xf32, #tpu.memory_space<vmem>>, %arg3: memref<1x8x128xf32, #tpu.memory_space<vmem>>, %arg4: memref<1x128xf32, #tpu.memory_space<vmem>>, %arg5: memref<1x128xf32, #tpu.memory_space<vmem>>, %arg6: memref<1x8x128xf32, #tpu.memory_space<vmem>>) attributes {dimension_semantics = [#tpu.dimension_semantics<parallel>, #tpu.dimension_semantics<parallel>], iteration_bounds = array<i64: 2, 1>, scalar_prefetch = 0 : i64, scratch_operands = 0 : i64, tpu.core_type = #tpu.core_type<tc>, window_params = [{transform_indices = @transform_0, window_bounds = array<i64: 1, 8, 128>}, {transform_indices = @transform_1, window_bounds = array<i64: 1, 8, 128>}, {transform_indices = @transform_2, window_bounds = array<i64: 1, 128>}, {transform_indices = @transform_3, window_bounds = array<i64: 1, 128>}, {transform_indices = @transform_4, window_bounds = array<i64: 1, 8, 128>}]} {
    %c0 = arith.constant 0 : index
    %c0_0 = arith.constant 0 : index
    %c0_1 = arith.constant 0 : index
    %0 = vector.load %arg2[%c0, %c0_0, %c0_1] : memref<1x8x128xf32, #tpu.memory_space<vmem>>, vector<1x8x128xf32>
    %c0_2 = arith.constant 0 : index
    %c0_3 = arith.constant 0 : index
    %c0_4 = arith.constant 0 : index
    %1 = vector.load %arg3[%c0_2, %c0_3, %c0_4] : memref<1x8x128xf32, #tpu.memory_space<vmem>>, vector<1x8x128xf32>
    %2 = arith.addf %0, %1 : vector<1x8x128xf32>
    %cst = arith.constant dense<0.000000e+00> : vector<1x128xf32>
    %3 = vector.multi_reduction <add>, %2, %cst [1] : vector<1x8x128xf32> to vector<1x128xf32>
    %4 = vector.shape_cast %3 : vector<1x128xf32> to vector<1x1x128xf32>
    %cst_5 = arith.constant 1.250000e-01 : f32
    %5 = vector.broadcast %cst_5 : f32 to vector<1x1x128xf32>
    %6 = arith.mulf %4, %5 : vector<1x1x128xf32>
    %7 = vector.broadcast %6 : vector<1x1x128xf32> to vector<1x8x128xf32>
    %8 = arith.subf %2, %7 : vector<1x8x128xf32>
    %9 = arith.mulf %8, %8 : vector<1x8x128xf32>
    %cst_6 = arith.constant dense<0.000000e+00> : vector<1x128xf32>
    %10 = vector.multi_reduction <add>, %9, %cst_6 [1] : vector<1x8x128xf32> to vector<1x128xf32>
    %11 = vector.shape_cast %10 : vector<1x128xf32> to vector<1x1x128xf32>
    %cst_7 = arith.constant 1.250000e-01 : f32
    %12 = vector.broadcast %cst_7 : f32 to vector<1x1x128xf32>
    %13 = arith.mulf %11, %12 : vector<1x1x128xf32>
    %cst_8 = arith.constant 9.99999974E-6 : f32
    %14 = vector.broadcast %cst_8 : f32 to vector<1x1x128xf32>
    %15 = arith.addf %13, %14 : vector<1x1x128xf32>
    %16 = math.rsqrt %15 : vector<1x1x128xf32>
    %c0_9 = arith.constant 0 : index
    %c0_10 = arith.constant 0 : index
    %17 = vector.load %arg4[%c0_9, %c0_10] : memref<1x128xf32, #tpu.memory_space<vmem>>, vector<1x128xf32>
    %18 = vector.shape_cast %17 : vector<1x128xf32> to vector<1x1x128xf32>
    %19 = arith.mulf %16, %18 : vector<1x1x128xf32>
    %c0_11 = arith.constant 0 : index
    %c0_12 = arith.constant 0 : index
    %20 = vector.load %arg5[%c0_11, %c0_12] : memref<1x128xf32, #tpu.memory_space<vmem>>, vector<1x128xf32>
    %21 = vector.shape_cast %20 : vector<1x128xf32> to vector<1x1x128xf32>
    %22 = vector.broadcast %19 : vector<1x1x128xf32> to vector<1x8x128xf32>
    %23 = arith.mulf %8, %22 : vector<1x8x128xf32>
    %24 = vector.broadcast %21 : vector<1x1x128xf32> to vector<1x8x128xf32>
    %25 = arith.addf %23, %24 : vector<1x8x128xf32>
    %c0_13 = arith.constant 0 : index
    %c0_14 = arith.constant 0 : index
    %c0_15 = arith.constant 0 : index
    %26 = vector.load %arg6[%c0_13, %c0_14, %c0_15] : memref<1x8x128xf32, #tpu.memory_space<vmem>>, vector<1x8x128xf32>
    tpu.vector_store %arg6[%c0_13, %c0_14, %c0_15], %25 {strides = array<i32>} : memref<1x8x128xf32, #tpu.memory_space<vmem>>, vector<1x8x128xf32>,
    return
  }
  func.func @transform_0(%arg0: i32, %arg1: i32) -> (i32, i32, i32) {
    %c0_i32 = arith.constant 0 : i32
    %c0_i32_0 = arith.constant 0 : i32
    return %arg0, %c0_i32, %arg1 : i32, i32, i32
  }
  func.func @transform_1(%arg0: i32, %arg1: i32) -> (i32, i32, i32) {
    %c0_i32 = arith.constant 0 : i32
    %c0_i32_0 = arith.constant 0 : i32
    return %arg0, %c0_i32, %arg1 : i32, i32, i32
  }
  func.func @transform_2(%arg0: i32, %arg1: i32) -> (i32, i32) {
    %c0_i32 = arith.constant 0 : i32
    %c0_i32_0 = arith.constant 0 : i32
    return %c0_i32, %arg1 : i32, i32
  }
  func.func @transform_3(%arg0: i32, %arg1: i32) -> (i32, i32) {
    %c0_i32 = arith.constant 0 : i32
    %c0_i32_0 = arith.constant 0 : i32
    return %c0_i32, %arg1 : i32, i32
  }
  func.func @transform_4(%arg0: i32, %arg1: i32) -> (i32, i32, i32) {
    %c0_i32 = arith.constant 0 : i32
    %c0_i32_0 = arith.constant 0 : i32
    return %arg0, %c0_i32, %arg1 : i32, i32, i32
  }
}

</mosaic_0001>

<bundles_post_ra>
// kernel: tpu_custom_call.1
= control target key start
LH: loop header
LB: loop body
LE: loop exit
PB: predicated region body
PF: predicated region fallthrough
CT: control target
= control target key end

     0   :  { %9 = vsyncpa [#allocation3], 0  ;;  %s973_s0 = inlined_call_operand.hbm [shape: f32[2,8,128], index: 0, kind: input, shape index: {}]   ;;  %s974_s1 = inlined_call_operand.hbm [shape: f32[2,8,128], index: 1, kind: input, shape index: {}]   ;;  %s975_s2 = inlined_call_operand.vmem [shape: f32[1,128], index: 2, kind: input, shape index: {}]   ;;  %s976_s3 = inlined_call_operand.vmem [shape: f32[1,128], index: 3, kind: input, shape index: {}]   ;;  %s977_s4 = inlined_call_operand.hbm [shape: f32[2,8,128], index: 4, kind: output, shape index: {}]  }
   0x1   :  { %11 = vsyncpa [#allocation3 + $0x1], 0 }
   0x2   :  { %12 = vsyncpa [#allocation6], 0 }
   0x3   :  { %14 = vsyncpa [#allocation6 + $0x1], 0 }
   0x4   :  { %15 = vsyncpa [#allocation4], 0 }
   0x5   :  { %17 = vsyncpa [#allocation4 + $0x1], 0  ;;  %s742_s15 = smov 0   ;;  %s744_s16 = smov 0  }
   0x6   :  { %s746_s17 = smov 0   ;;  %s748_s18 = smov 0  }
   0x7   :  { %s750_s19 = smov 0   ;;  %s752_s20 = smov 0  }
   0x8 LB: > { %s478_s21 = sadd.s32 4294967295, %s712_s20   ;;  %s479_s22 = sadd.s32 4294967294, %s712_s20   ;;  %s712_s20 = sphi %s752_s20, %s23_s20   ;;  %s708_s19 = sphi %s750_s19, %s997_s19   ;;  %s704_s18 = sphi %s748_s18, %s996_s18   ;;  %s700_s17 = sphi %s746_s17, %s995_s17   ;;  %s696_s16 = sphi %s744_s16, %s994_s16   ;;  %s692_s15 = sphi %s742_s15, %s993_s15  }
   0x9   : > { %s35_s23 = sadd.s32 1, %s708_s19  ;;  %s44_s24 = sadd.s32 1, %s700_s17 }
   0xa   : > { %p37_p0 = scmp.ge.s32.totalorder %s35_s23, 2  ;;  %p51_p1 = scmp.ne.s32.totalorder %s700_s17, %s696_s16 }
   0xb   : > { %p52_p2 = scmp.eq.s32.totalorder %s712_s20, 0  ;;  %p57_p3 = scmp.ne.s32.totalorder %s696_s16, %s692_s15 }
   0xc   : > { %s999_s23 = smov (%p37_p0, %s35_s23), 0  ;;  %p58_p5 = scmp.eq.s32.totalorder %s478_s21, 0 }
   0xd   : > { %p783_p4 = por %p52_p2, %p51_p1  ;;  %s39_s26 = ssub.s32 %s708_s19, %s999_s23 }
   0xe   : > { %p163_p6 = scmp.eq.s32.totalorder %s478_s21, 1  ;;  %p42_p7 = scmp.eq.s32.totalorder %s39_s26, 0 }
   0xf   : > { %p789_p8 = por %p58_p5, %p57_p3  ;;  %p169_p10 = scmp.eq.s32.totalorder %s479_s22, 1 }
  0x10   : > { %p793_p9 = por %p163_p6, %p51_p1  ;;  %p514_p13 = scmp.lt.s32.totalorder %s712_s20, 2 }
  0x11   : > { %s981_s27 = scalar_select %p789_p8, 1, 0 }
  0x12   : > { %s982_s28 = scalar_select %p793_p9, 1, 0 }
  0x13   : > { %s798_s29 = scalar_select %p42_p7, %s700_s17, %s44_s24  }
  0x14   : > { %p800_p11 = por %p169_p10, %p57_p3  ;;  %s807_s5 = sand.u32 1, %s700_s17  }
  0x15   : > { %s484_s6 = sshll.u32 %s807_s5, 3  ;;  %s485_s7 = sshll.u32 %s708_s19, 7 }
  0x16   : > { %s983_s30 = scalar_select %p800_p11, 1, 0 }
  0x17   : > { %s816_s10 = scalar_lea.hbm %s973_s0, %s485_s7  ;;  %s205_s11 = scalar_lea.vmem [#allocation2], %s484_s6 }
  0x18   : > { %s213_s12 = sshll.u32 %s205_s11, 4  ;;  %p824_p0 = pnand %p514_p13, %p783_p4  ;;  %s820_s12 = int_to_ptr.vmem [resolvable:$true] %s213_s12 }
  0x19   : > { %s202_s14 = scalar_lea.sflag [#allocation3], %s807_s5  ;;  %s566_s21 = scalar_lea.hbm %s816_s10, 128 }
  0x1a   : > { %p567_p3 = scmp.ne.s32.totalorder %s816_s10, %s566_s21  ;;  %p568_p5 = pneg %p824_p0 }
  0x1b   : > { %s571_s25 = scalar_lea.hbm %s973_s0, 256  ;;  %p572_p4 = scmp.lt.u32.totalorder %s816_s10, %s973_s0 }
  0x1c   : > { %p569_p6 = pnand %p568_p5, %p567_p3  ;;  %p573_p10 = scmp.lt.u32.totalorder %s571_s25, %s566_s21 }
  0x1d   : > { %p575_p12 = scmp.lt.u32.totalorder %s566_s21, %s816_s10 }
  0x1e   : > { %p570_p7 = pneg %p569_p6  ;;  %p574_p13 = por %p573_p10, %p572_p4 }
  0x20   : > { %p576_p1 = por %p575_p12, %p574_p13 }
  0x22   : > { %p577_p2 = pnand %p576_p1, %p570_p7 }
  0x24   : > { %580 = shalt.err (!%p577_p2)
}
  0x25   : > { %s581_s9 = scalar_lea.vmem %s820_s12, 128  ;;  %s714_s11 = smov [#allocation2]  }
  0x26   : > { %p582_p3 = scmp.ne.s32.totalorder %s820_s12, %s581_s9  ;;  %s586_s22 = sshll.u32 %s714_s11, 4  ;;  %s587_s22 = int_to_ptr.vmem [resolvable:$false] %s586_s22 }
  0x27   : > { %s588_s24 = scalar_lea.vmem %s587_s22, 256  ;;  %p589_p9 = scmp.lt.s32.totalorder %s820_s12, %s587_s22 }
  0x28   : > { %p584_p6 = pnand %p582_p3, %p568_p5  ;;  %p590_p4 = scmp.lt.s32.totalorder %s588_s24, %s581_s9 }
  0x2a   : > { %p585_p11 = pneg %p584_p6  ;;  %p591_p10 = por %p590_p4, %p589_p9 }
  0x2c   : > { %p592_p12 = pnand %p591_p10, %p585_p11 }
  0x2e   : > { %595 = shalt.err (!%p592_p12)
}
  0x2f   : > { %506 = dma.hbm_to_vmem [thread:$0]  (!%p824_p0), %s816_s10, 128, %s820_s12, %s202_s14  }
  0x30   : > { %p985_p1 = scmp.lt.s32.totalorder %s712_s20, 3  ;;  %p986_p2 = scmp.ge.s32.totalorder %s712_s20, 1 }
  0x31   : > { %s869_s8 = scalar_lea.hbm %s974_s1, %s485_s7  ;;  %s224_s9 = scalar_lea.vmem [#allocation5], %s484_s6 }
  0x32   : > { %p860_p7 = pnand %p986_p2, %p985_p1  ;;  %s232_s11 = sshll.u32 %s224_s9, 4  ;;  %s233_s11 = int_to_ptr.vmem [resolvable:$true] %s232_s11 }
  0x33   : > { %s221_s10 = scalar_lea.sflag [#allocation6], %s807_s5  ;;  %s596_s12 = scalar_lea.hbm %s869_s8, 128 }
  0x34   : > { %s987_s21 = scalar_select %p860_p7, 1, 0 }
  0x35   : > { %p597_p9 = scmp.ne.s32.totalorder %s869_s8, %s596_s12  ;;  %s601_s7 = scalar_lea.hbm %s974_s1, 256 }
  0x36   : > { %p602_p3 = scmp.lt.u32.totalorder %s869_s8, %s974_s1  ;;  %p603_p6 = scmp.lt.u32.totalorder %s601_s7, %s596_s12 }
  0x37   : > { %p599_p11 = pnand %p597_p9, %p568_p5  ;;  %p605_p10 = scmp.lt.u32.totalorder %s596_s12, %s869_s8 }
  0x38   : > { %p604_p4 = por %p603_p6, %p602_p3 }
  0x39   : > { %p600_p13 = pneg %p599_p11 }
  0x3a   : > { %p606_p12 = por %p605_p10, %p604_p4 }
  0x3c   : > { %p607_p1 = pnand %p606_p12, %p600_p13 }
  0x3e   : > { %610 = shalt.err (!%p607_p1)
}
  0x3f   : > { %s611_s5 = scalar_lea.vmem %s233_s11, 128  ;;  %s715_s6 = smov [#allocation5]  }
  0x40   : > { %p612_p2 = scmp.ne.s32.totalorder %s233_s11, %s611_s5  ;;  %s616_s26 = sshll.u32 %s715_s6, 4  ;;  %s617_s26 = int_to_ptr.vmem [resolvable:$false] %s616_s26 }
  0x41   : > { %s618_s9 = scalar_lea.vmem %s617_s26, 256  ;;  %p619_p8 = scmp.lt.s32.totalorder %s233_s11, %s617_s26 }
  0x42   : > { %p614_p9 = pnand %p612_p2, %p568_p5  ;;  %p620_p7 = scmp.lt.s32.totalorder %s618_s9, %s611_s5 }
  0x44   : > { %p615_p11 = pneg %p614_p9  ;;  %p621_p3 = por %p620_p7, %p619_p8 }
  0x46   : > { %p622_p6 = pnand %p621_p3, %p615_p11 }
  0x48   : > { %625 = shalt.err (!%p622_p6)
}
  0x49   : > { %509 = dma.hbm_to_vmem [thread:$0]  (!%p824_p0), %s869_s8, 128, %s233_s11, %s221_s10  }
  0x4a   : > { %p988_p13 = scmp.ne.s32.totalorder %s987_s21, 0 }
  0x4b   : > { %s896_s12 = sand.u32 (!%p988_p13), 1, %s696_s16   ;;  %p989_p8 = scmp.ne.s32.totalorder (!%p988_p13), %s981_s27, 0 }
  0x4c   : > { %241 = sbr.rel (%p988_p13) target bundleno = 156 (0x9c), region = 36  ;;  %s899_s14 = sshll.u32 (!%p988_p13), %s896_s12, 3 }
  0x4d   : > { %s244_s22 = scalar_lea.sflag (!%p988_p13), [#allocation3], %s896_s12  ;;  %s247_s7 = scalar_lea.vmem (!%p988_p13), [#allocation2], %s899_s14 }
  0x53   : > { %679 = dma.done.wait (%p989_p8), %s244_s22, 128  }
  0x54   : > { %681 = vsyncadd (%p989_p8), %s244_s22, 4294967168  ;;  %s253_s13 = scalar_lea.sflag [#allocation6], %s896_s12  ;;  %s256_s21 = scalar_lea.vmem [#allocation5], %s899_s14 }
  0x55   : > { %683 = dma.done.wait (%p989_p8), %s253_s13, 128  }
  0x56   : > { %685 = vsyncadd (%p989_p8), %s253_s13, 4294967168  ;;  %v298_v0 = vld [vmem:[%s247_s7] sm:$0xff]  ;;  %v299_v1 = vld [vmem:[%s256_s21] sm:$0xff]  ;;  %v322_v20 = vlaneseq  ;;  %s291_s24 = scalar_lea.vmem [#allocation7], %s899_s14  ;;  %s494_s5 = sshll.u32 %s704_s18, 7 }
  0x57   : > { %v300_v2 = vadd.f32 %v299_v1, %v298_v0  ;;  %v319_v22 = vld [vmem:[%s975_s2] sm:$0x1]  ;;  %s350_s25 = sshll.u32 %s291_s24, 4  ;;  %s926_s9 = scalar_lea.hbm %s977_s4, %s494_s5  ;;  %s921_s25 = int_to_ptr.vmem [resolvable:$true] %s350_s25 }
  0x58   : > { %v323_v21 = vshrl.u32 %v322_v20, 7  ;;  %v492_v27 = vld [vmem:[%s976_s3] ss:$0 sm:$0xff]  ;;  %s336_s22 = scalar_lea.sflag [#allocation4], %s896_s12  ;;  %s626_s7 = scalar_lea.vmem %s921_s25, 128 }
  0x59   : > { %v301_v3 = vrot.slane %v300_v2, 4  ;;  %p627_p0 = scmp.ne.s32.totalorder %s921_s25, %s626_s7  ;;  %p990_p5 = scmp.ne.s32.totalorder %s982_s28, 0 }
  0x5a   : > { %v324_v23 = vsub.s32 0, %v323_v21  ;;  %s716_s18 = smov [#allocation7]  }
  0x5b   : > { %v302_v4 = vadd.f32 %v301_v3, %v300_v2  ;;  %p628_p7 = pnand %p627_p0, %p990_p5  ;;  %s630_s14 = sshll.u32 %s716_s18, 4  ;;  %s631_s14 = int_to_ptr.vmem [resolvable:$false] %s630_s14 }
  0x5c   : > { %s632_s13 = scalar_lea.vmem %s631_s14, 256  ;;  %p633_p10 = scmp.lt.s32.totalorder %s921_s25, %s631_s14 }
  0x5d   : > { %v303_v5 = vrot.slane %v302_v4, 2  ;;  %p629_p4 = pneg %p628_p7  ;;  %p634_p12 = scmp.lt.s32.totalorder %s632_s13, %s626_s7 }
  0x5f   : > { %v304_v6 = vadd.f32 %v303_v5, %v302_v4  ;;  %p635_p1 = por %p634_p12, %p633_p10 }
  0x61   : > { %v305_v7 = vrot.slane %v304_v6, 1  ;;  %p636_p2 = pnand %p635_p1, %p629_p4 }
  0x63   : > { %v306_v8 = vadd.f32 %v305_v7, %v304_v6 }
  0x65   : > { %v307_v9 = vmul.f32 0.125, %v306_v8 }
  0x67   : > { %v308_v10 = vsub.f32 %v300_v2, %v307_v9 }
  0x69   : > { %v309_v11 = vmul.f32 %v308_v10, %v308_v10 }
  0x6b   : > { %v310_v12 = vrot.slane %v309_v11, 4 }
  0x6d   : > { %v311_v13 = vadd.f32 %v310_v12, %v309_v11 }
  0x6f   : > { %v312_v14 = vrot.slane %v311_v13, 2 }
  0x71   : > { %v313_v15 = vadd.f32 %v312_v14, %v311_v13 }
  0x73   : > { %v314_v16 = vrot.slane %v313_v15, 1 }
  0x75   : > { %v315_v17 = vadd.f32 %v314_v16, %v313_v15 }
  0x77   : > { %v316_v18 = vmul.f32 0.125, %v315_v17 }
  0x79   : > { %v317_v19 = vadd.f32 1e-05, %v316_v18 }
  0x7b   : > { %564 = vrsqrt.f32 %v317_v19 }
  0x85   : > { %v565_v24 = vpop.eup %564 }
  0x86   : > { %v320_v25 = vmul.f32 %v565_v24, %v319_v22 }
  0x88   : > { %v325_v26 = vrot.slane %v320_v25, %v324_v23 }
  0x8a   : > { %v326_v28 = vmul.f32 %v325_v26, %v308_v10 }
  0x8c   : > { %v333_v29 = vadd.f32 %v492_v27, %v326_v28 }
  0x8e   : > { %334 = vst [vmem:[%s291_s24] sm:$0xff] %v333_v29 }
  0x8f   : > { %639 = shalt.err (!%p636_p2)
}
  0x90   : > { %s640_s12 = scalar_lea.hbm %s926_s9, 128  ;;  %s644_s8 = scalar_lea.hbm %s977_s4, 256 }
  0x91   : > { %p641_p9 = scmp.ne.s32.totalorder %s926_s9, %s640_s12  ;;  %p645_p6 = scmp.lt.u32.totalorder %s926_s9, %s977_s4 }
  0x92   : > { %p646_p13 = scmp.lt.u32.totalorder %s644_s8, %s640_s12  ;;  %p648_p0 = scmp.lt.u32.totalorder %s640_s12, %s926_s9 }
  0x93   : > { %p642_p11 = pnand %p641_p9, %p990_p5 }
  0x94   : > { %p647_p8 = por %p646_p13, %p645_p6 }
  0x95   : > { %p643_p3 = pneg %p642_p11 }
  0x96   : > { %p649_p7 = por %p648_p0, %p647_p8 }
  0x98   : > { %p650_p4 = pnand %p649_p7, %p643_p3 }
  0x9a   : > { %653 = shalt.err (!%p650_p4)
}
  0x9b   : > { %501 = dma.vmem_to_hbm [thread:$0]  (%p990_p5), %s921_s25, 128, %s926_s9, %s336_s22  }
  0x9c PF: > { %s362_s24 = sand.u32 1, %s692_s15   ;;  %p991_p10 = scmp.ne.s32.totalorder %s983_s30, 0 }
  0x9d   : > { %p992_p12 = scmp.ge.s32.totalorder %s712_s20, 2  ;;  %s363_s5 = scalar_lea.sflag [#allocation4], %s362_s24 }
  0x9f   : > { %p511_p1 = pnand %p992_p12, %p991_p10 }
  0xa1   : > { %687 = dma.done.wait (!%p511_p1), %s363_s5, 128  }
  0xa2   : > { %689 = vsyncadd (!%p511_p1), %s363_s5, 4294967168  ;;  %s23_s20 = sadd.s32 1, %s712_s20   ;;  %s993_s15 = smov %s696_s16 }
  0xa3   : > { %p20_p2 = scmp.ge.s32.totalorder %s23_s20, 4   ;;  %s994_s16 = smov %s700_s17 }
  0xa4   : > { %s995_s17 = smov %s798_s29  ;;  %s996_s18 = smov %s708_s19 }
  0xa5   : > { %s997_s19 = smov %s999_s23  ;;  %22 = sbr.rel (!%p20_p2) target bundleno = 8 (0x8), region = 100 }
  0xac   :  { %368 = vsyncpa [#allocation3], 1 }
  0xad   :  { %370 = vsyncpa [#allocation3 + $0x1], 1 }
  0xae   :  { %371 = vsyncpa [#allocation6], 1 }
  0xaf   :  { %373 = vsyncpa [#allocation6 + $0x1], 1 }
  0xb0   :  { %374 = vsyncpa [#allocation4], 1 }
  0xb1   :  { %376 = vsyncpa [#allocation4 + $0x1], 1 }

</bundles_post_ra>
